<compile_context>
chip_gen: v7x
topology: tpu7x:2x2x1
jax: 0.10.0
libtpu: 0.0.40
codegen_flags: <defaults>
</compile_context>

<pallas_src>
import functools

import jax
import jax.numpy as jnp
from jax import lax
from jax.experimental import pallas as pl
from jax.experimental.pallas import tpu as pltpu

EPS = 1e-5

# Mask-'B' live taps of the 3x3 masked conv (kh, kw): rows above the center
# plus the center row up to and including the center tap. The other 4 taps
# have identically-zero folded weights and are skipped entirely.
LIVE_TAPS = ((0, 0), (0, 1), (0, 2), (1, 0), (1, 1))


def _bn_relu(z, gamma, beta):
    """Training-mode BatchNorm2d + ReLU on (C, M): per-row stats over M."""
    inv_m = 1.0 / z.shape[1]
    mean = jnp.sum(z, axis=1, keepdims=True) * inv_m
    ex2 = jnp.sum(z * z, axis=1, keepdims=True) * inv_m
    var = ex2 - mean * mean                         # single pass over z
    scale = lax.rsqrt(var + EPS) * gamma            # (C, 1); rsqrt on the EUP
    return jnp.maximum((z - mean) * scale + beta, 0.0)


def _mm(a, b, use_bf16):
    if use_bf16:
        a = a.astype(jnp.bfloat16)
        b = b.astype(jnp.bfloat16)
    return jnp.dot(a, b, preferred_element_type=jnp.float32)


def resblock_kernel(x_ref, w1_ref, b1_ref, g1_ref, be1_ref,
                    w2_ref, b2_ref, g2_ref, be2_ref, masks_ref,
                    w3_ref, b3_ref, g3_ref, be3_ref, o_ref,
                    *, shifts, use_bf16):
    x = x_ref[...]                                              # (C, M)

    # ---- stage 1: 1x1 conv + BN + ReLU -> (C2, M) ----
    y1 = _mm(w1_ref[...], x, use_bf16) + b1_ref[...]
    y1 = _bn_relu(y1, g1_ref[...], be1_ref[...])

    # ---- stage 2: masked 3x3 conv (5 live taps) + BN + ReLU -> (C2, M) ----
    # shifted[m] = y1[m - k] implements the (dh, dw) spatial offset on the
    # flattened n*H*W + h*W + w index; every position that would cross a
    # row / image boundary (or the roll wrap) is zeroed by its output mask.
    acc = None
    for t, k in enumerate(shifts):                              # static unroll
        if k == 0:                                              # center tap
            src = y1
        else:
            src = pltpu.roll(y1, shift=k, axis=1) * masks_ref[t:t + 1, :]
        contrib = _mm(w2_ref[t], src, use_bf16)
        acc = contrib if acc is None else acc + contrib
    y2 = _bn_relu(acc + b2_ref[...], g2_ref[...], be2_ref[...])

    # ---- stage 3: 1x1 conv + BN + ReLU, skip add, final ReLU -> (C, M) ----
    y3 = _mm(w3_ref[...], y2, use_bf16) + b3_ref[...]
    y3 = _bn_relu(y3, g3_ref[...], be3_ref[...])
    o_ref[...] = jnp.maximum(y3 + x, 0.0)


def _tap_masks(N, H, W):
    """(num_taps, N*H*W) f32 validity masks per output position."""
    hh = jnp.arange(H)[:, None]
    ww = jnp.arange(W)[None, :]
    rows = []
    for kh, kw in LIVE_TAPS:
        dh, dw = kh - 1, kw - 1
        ok = ((hh + dh >= 0) & (hh + dh < H) &
              (ww + dw >= 0) & (ww + dw < W)).astype(jnp.float32)   # (H, W)
        rows.append(jnp.broadcast_to(ok.reshape(1, H * W), (N, H * W)).reshape(-1))
    return jnp.stack(rows)


def residual_block_pallas(x_nchw, params, *, use_bf16=False):
    N, C, H, W = x_nchw.shape
    C2 = C // 2
    M = N * H * W

    # Lane-dense layout plumbing (outside the kernel): channels on sublanes,
    # M = N*H*W on the 128-lane axis.
    x_cm = jnp.transpose(x_nchw, (1, 0, 2, 3)).reshape(C, M)

    shifts = tuple((1 - kh) * W + (1 - kw) for kh, kw in LIVE_TAPS)
    masks = _tap_masks(N, H, W)                                 # (5, M)

    kernel = functools.partial(resblock_kernel, shifts=shifts, use_bf16=use_bf16)
    vmem = pl.BlockSpec(memory_space=pltpu.MemorySpace.VMEM)

    out_cm = pl.pallas_call(
        kernel,
        out_shape=jax.ShapeDtypeStruct((C, M), jnp.float32),
        in_specs=[vmem] * 14,
        out_specs=vmem,
    )(x_cm,
      params['w1'], params['b1'], params['g1'], params['be1'],
      params['w2_taps'], params['b2'], params['g2'], params['be2'], masks,
      params['w3'], params['b3'], params['g3'], params['be3'])

    return out_cm.reshape(C, N, H, W).transpose(1, 0, 2, 3)     # back to NCHW


def init_params(key, h):
    # Deterministic synthetic parameters (shapes from ResidualBlock.__init__).
    h2 = h // 2
    keys = jax.random.split(key, 6)
    w1 = jax.random.normal(keys[0], (h2, h, 1, 1), jnp.float32) * 0.1   # OIHW
    b1 = jax.random.normal(keys[1], (h2,), jnp.float32) * 0.1
    w2 = jax.random.normal(keys[2], (h2, h2, 3, 3), jnp.float32) * 0.1  # OIHW
    b2 = jax.random.normal(keys[3], (h2,), jnp.float32) * 0.1
    w3 = jax.random.normal(keys[4], (h, h2, 1, 1), jnp.float32) * 0.1   # OIHW
    b3 = jax.random.normal(keys[5], (h,), jnp.float32) * 0.1

    # MaskedConv2d type 'B' mask for 3x3 (half_h = half_w = 1, center kept).
    mask = jnp.zeros((3, 3), jnp.float32)
    mask = mask.at[0, :].set(1.0)
    mask = mask.at[1, 0].set(1.0)
    mask = mask.at[1, 1].set(1.0)
    w2m = w2 * mask[None, None, :, :]

    return dict(
        # kernel-layout params: (Cout, Cin) matrices, (C, 1) per-channel vecs
        w1=w1[:, :, 0, 0],                                   # (h2, h)
        b1=b1.reshape(h2, 1),
        g1=jnp.ones((h2, 1), jnp.float32), be1=jnp.zeros((h2, 1), jnp.float32),
        w2_taps=jnp.stack([w2m[:, :, kh, kw] for kh, kw in LIVE_TAPS]),  # (5, h2, h2)
        b2=b2.reshape(h2, 1),
        g2=jnp.ones((h2, 1), jnp.float32), be2=jnp.zeros((h2, 1), jnp.float32),
        w3=w3[:, :, 0, 0],                                   # (h, h2)
        b3=b3.reshape(h, 1),
        g3=jnp.ones((h, 1), jnp.float32), be3=jnp.zeros((h, 1), jnp.float32),
        # OIHW copies for the pure-JAX reference
        w1_oihw=w1, w2m_oihw=w2m, w3_oihw=w3,
    )


def reference(x_nchw, params):
    # Pure-JAX NCHW reference of the same forward pass (independent conv path).
    def bn_relu(z, g, b):
        mean = jnp.mean(z, axis=(0, 2, 3), keepdims=True)
        var = jnp.mean((z - mean) ** 2, axis=(0, 2, 3), keepdims=True)
        zn = (z - mean) / jnp.sqrt(var + EPS)
        return jnp.maximum(zn * g.reshape(1, -1, 1, 1) + b.reshape(1, -1, 1, 1), 0.0)

    dn = ('NCHW', 'OIHW', 'NCHW')
    y = lax.conv_general_dilated(x_nchw, params['w1_oihw'], (1, 1), 'VALID',
                                 dimension_numbers=dn)
    y = bn_relu(y + params['b1'].reshape(1, -1, 1, 1), params['g1'], params['be1'])

    y = lax.conv_general_dilated(y, params['w2m_oihw'], (1, 1), ((1, 1), (1, 1)),
                                 dimension_numbers=dn)
    y = bn_relu(y + params['b2'].reshape(1, -1, 1, 1), params['g2'], params['be2'])

    y = lax.conv_general_dilated(y, params['w3_oihw'], (1, 1), 'VALID',
                                 dimension_numbers=dn)
    y = bn_relu(y + params['b3'].reshape(1, -1, 1, 1), params['g3'], params['be3'])
    return jnp.maximum(y + x_nchw, 0.0)


if __name__ == "__main__":
    key = jax.random.PRNGKey(0)
    kx, kp = jax.random.split(key)

    N, Cin, H, W = 2, 8, 16, 16                 # PyTorch NCHW input, h = 8
    x_nchw = jax.random.normal(kx, (N, Cin, H, W), jnp.float32)
    params = init_params(kp, Cin)

    out = residual_block_pallas(x_nchw, params)
    out = jax.block_until_ready(out)

    ref = reference(x_nchw, params)
    err = float(jnp.max(jnp.abs(out - ref)))
    assert out.shape == (N, Cin, H, W)
    assert err < 1e-3, f"max abs error too large: {err}"
    print("KERNEL_OK")
</pallas_src>

<mosaic_0001>
module attributes {stable_mosaic.version = 11 : i64} {
  func.func @resblock_kernel(%arg0: memref<8x512xf32, #tpu.memory_space<vmem>>, %arg1: memref<4x8xf32, #tpu.memory_space<vmem>>, %arg2: memref<4x1xf32, #tpu.memory_space<vmem>>, %arg3: memref<4x1xf32, #tpu.memory_space<vmem>>, %arg4: memref<4x1xf32, #tpu.memory_space<vmem>>, %arg5: memref<5x4x4xf32, #tpu.memory_space<vmem>>, %arg6: memref<4x1xf32, #tpu.memory_space<vmem>>, %arg7: memref<4x1xf32, #tpu.memory_space<vmem>>, %arg8: memref<4x1xf32, #tpu.memory_space<vmem>>, %arg9: memref<5x512xf32, #tpu.memory_space<vmem>>, %arg10: memref<8x4xf32, #tpu.memory_space<vmem>>, %arg11: memref<8x1xf32, #tpu.memory_space<vmem>>, %arg12: memref<8x1xf32, #tpu.memory_space<vmem>>, %arg13: memref<8x1xf32, #tpu.memory_space<vmem>>, %arg14: memref<8x512xf32, #tpu.memory_space<vmem>>) attributes {dimension_semantics = [], scalar_prefetch = 0 : i64, scratch_operands = 0 : i64, tpu.core_type = #tpu.core_type<tc>} {
    %c0 = arith.constant 0 : index
    %c0_0 = arith.constant 0 : index
    %0 = vector.load %arg0[%c0, %c0_0] : memref<8x512xf32, #tpu.memory_space<vmem>>, vector<8x512xf32>
    %c0_1 = arith.constant 0 : index
    %c0_2 = arith.constant 0 : index
    %1 = vector.load %arg1[%c0_1, %c0_2] : memref<4x8xf32, #tpu.memory_space<vmem>>, vector<4x8xf32>
    %cst = arith.constant dense<0.000000e+00> : vector<4x512xf32>
    %2 = tpu.matmul %1, %0, %cst {dimension_numbers = #tpu.dot_dimension_numbers<[1], [0], [0], [1], [0, 0, 1, 1], [], []>} : vector<4x8xf32>, vector<8x512xf32>, vector<4x512xf32> -> vector<4x512xf32>
    %c0_3 = arith.constant 0 : index
    %c0_4 = arith.constant 0 : index
    %3 = vector.load %arg2[%c0_3, %c0_4] : memref<4x1xf32, #tpu.memory_space<vmem>>, vector<4x1xf32>
    %4 = vector.broadcast %3 : vector<4x1xf32> to vector<4x512xf32>
    %5 = arith.addf %2, %4 : vector<4x512xf32>
    %c0_5 = arith.constant 0 : index
    %c0_6 = arith.constant 0 : index
    %6 = vector.load %arg3[%c0_5, %c0_6] : memref<4x1xf32, #tpu.memory_space<vmem>>, vector<4x1xf32>
    %c0_7 = arith.constant 0 : index
    %c0_8 = arith.constant 0 : index
    %7 = vector.load %arg4[%c0_7, %c0_8] : memref<4x1xf32, #tpu.memory_space<vmem>>, vector<4x1xf32>
    %cst_9 = arith.constant dense<0.000000e+00> : vector<4xf32>
    %8 = vector.multi_reduction <add>, %5, %cst_9 [1] : vector<4x512xf32> to vector<4xf32>
    %9 = vector.shape_cast %8 : vector<4xf32> to vector<4x1xf32>
    %cst_10 = arith.constant 0.001953125 : f32
    %10 = vector.broadcast %cst_10 : f32 to vector<4x1xf32>
    %11 = arith.mulf %9, %10 : vector<4x1xf32>
    %12 = arith.mulf %5, %5 : vector<4x512xf32>
    %cst_11 = arith.constant dense<0.000000e+00> : vector<4xf32>
    %13 = vector.multi_reduction <add>, %12, %cst_11 [1] : vector<4x512xf32> to vector<4xf32>
    %14 = vector.shape_cast %13 : vector<4xf32> to vector<4x1xf32>
    %cst_12 = arith.constant 0.001953125 : f32
    %15 = vector.broadcast %cst_12 : f32 to vector<4x1xf32>
    %16 = arith.mulf %14, %15 : vector<4x1xf32>
    %17 = arith.mulf %11, %11 : vector<4x1xf32>
    %18 = arith.subf %16, %17 : vector<4x1xf32>
    %cst_13 = arith.constant 9.99999974E-6 : f32
    %19 = vector.broadcast %cst_13 : f32 to vector<4x1xf32>
    %20 = arith.addf %18, %19 : vector<4x1xf32>
    %21 = math.rsqrt %20 : vector<4x1xf32>
    %22 = arith.mulf %21, %6 : vector<4x1xf32>
    %23 = vector.broadcast %11 : vector<4x1xf32> to vector<4x512xf32>
    %24 = arith.subf %5, %23 : vector<4x512xf32>
    %25 = vector.broadcast %22 : vector<4x1xf32> to vector<4x512xf32>
    %26 = arith.mulf %24, %25 : vector<4x512xf32>
    %27 = vector.broadcast %7 : vector<4x1xf32> to vector<4x512xf32>
    %28 = arith.addf %26, %27 : vector<4x512xf32>
    %cst_14 = arith.constant 0.000000e+00 : f32
    %29 = vector.broadcast %cst_14 : f32 to vector<4x512xf32>
    %30 = arith.maximumf %28, %29 : vector<4x512xf32>
    %c17_i32 = arith.constant 17 : i32
    %31 = tpu.dynamic_rotate %30 by %c17_i32 dim 1 : vector<4x512xf32>, i32 -> vector<4x512xf32>
    %c0_15 = arith.constant 0 : index
    %c0_16 = arith.constant 0 : index
    %32 = vector.load %arg9[%c0_15, %c0_16] : memref<5x512xf32, #tpu.memory_space<vmem>>, vector<1x512xf32>
    %33 = vector.broadcast %32 : vector<1x512xf32> to vector<4x512xf32>
    %34 = arith.mulf %31, %33 : vector<4x512xf32>
    %c0_17 = arith.constant 0 : index
    %c0_18 = arith.constant 0 : index
    %c0_19 = arith.constant 0 : index
    %35 = vector.load %arg5[%c0_17, %c0_18, %c0_19] : memref<5x4x4xf32, #tpu.memory_space<vmem>>, vector<1x4x4xf32>
    %36 = vector.shape_cast %35 : vector<1x4x4xf32> to vector<4x4xf32>
    %cst_20 = arith.constant dense<0.000000e+00> : vector<4x512xf32>
    %37 = tpu.matmul %36, %34, %cst_20 {dimension_numbers = #tpu.dot_dimension_numbers<[1], [0], [0], [1], [0, 0, 1, 1], [], []>} : vector<4x4xf32>, vector<4x512xf32>, vector<4x512xf32> -> vector<4x512xf32>
    %c16_i32 = arith.constant 16 : i32
    %38 = tpu.dynamic_rotate %30 by %c16_i32 dim 1 : vector<4x512xf32>, i32 -> vector<4x512xf32>
    %c1 = arith.constant 1 : index
    %c0_21 = arith.constant 0 : index
    %39 = vector.load %arg9[%c1, %c0_21] : memref<5x512xf32, #tpu.memory_space<vmem>>, vector<1x512xf32>
    %40 = vector.broadcast %39 : vector<1x512xf32> to vector<4x512xf32>
    %41 = arith.mulf %38, %40 : vector<4x512xf32>
    %c1_22 = arith.constant 1 : index
    %c0_23 = arith.constant 0 : index
    %c0_24 = arith.constant 0 : index
    %42 = vector.load %arg5[%c1_22, %c0_23, %c0_24] : memref<5x4x4xf32, #tpu.memory_space<vmem>>, vector<1x4x4xf32>
    %43 = vector.shape_cast %42 : vector<1x4x4xf32> to vector<4x4xf32>
    %cst_25 = arith.constant dense<0.000000e+00> : vector<4x512xf32>
    %44 = tpu.matmul %43, %41, %cst_25 {dimension_numbers = #tpu.dot_dimension_numbers<[1], [0], [0], [1], [0, 0, 1, 1], [], []>} : vector<4x4xf32>, vector<4x512xf32>, vector<4x512xf32> -> vector<4x512xf32>
    %45 = arith.addf %37, %44 : vector<4x512xf32>
    %c15_i32 = arith.constant 15 : i32
    %46 = tpu.dynamic_rotate %30 by %c15_i32 dim 1 : vector<4x512xf32>, i32 -> vector<4x512xf32>
    %c2 = arith.constant 2 : index
    %c0_26 = arith.constant 0 : index
    %47 = vector.load %arg9[%c2, %c0_26] : memref<5x512xf32, #tpu.memory_space<vmem>>, vector<1x512xf32>
    %48 = vector.broadcast %47 : vector<1x512xf32> to vector<4x512xf32>
    %49 = arith.mulf %46, %48 : vector<4x512xf32>
    %c2_27 = arith.constant 2 : index
    %c0_28 = arith.constant 0 : index
    %c0_29 = arith.constant 0 : index
    %50 = vector.load %arg5[%c2_27, %c0_28, %c0_29] : memref<5x4x4xf32, #tpu.memory_space<vmem>>, vector<1x4x4xf32>
    %51 = vector.shape_cast %50 : vector<1x4x4xf32> to vector<4x4xf32>
    %cst_30 = arith.constant dense<0.000000e+00> : vector<4x512xf32>
    %52 = tpu.matmul %51, %49, %cst_30 {dimension_numbers = #tpu.dot_dimension_numbers<[1], [0], [0], [1], [0, 0, 1, 1], [], []>} : vector<4x4xf32>, vector<4x512xf32>, vector<4x512xf32> -> vector<4x512xf32>
    %53 = arith.addf %45, %52 : vector<4x512xf32>
    %c1_i32 = arith.constant 1 : i32
    %54 = tpu.dynamic_rotate %30 by %c1_i32 dim 1 : vector<4x512xf32>, i32 -> vector<4x512xf32>
    %c3 = arith.constant 3 : index
    %c0_31 = arith.constant 0 : index
    %55 = vector.load %arg9[%c3, %c0_31] : memref<5x512xf32, #tpu.memory_space<vmem>>, vector<1x512xf32>
    %56 = vector.broadcast %55 : vector<1x512xf32> to vector<4x512xf32>
    %57 = arith.mulf %54, %56 : vector<4x512xf32>
    %c3_32 = arith.constant 3 : index
    %c0_33 = arith.constant 0 : index
    %c0_34 = arith.constant 0 : index
    %58 = vector.load %arg5[%c3_32, %c0_33, %c0_34] : memref<5x4x4xf32, #tpu.memory_space<vmem>>, vector<1x4x4xf32>
    %59 = vector.shape_cast %58 : vector<1x4x4xf32> to vector<4x4xf32>
    %cst_35 = arith.constant dense<0.000000e+00> : vector<4x512xf32>
    %60 = tpu.matmul %59, %57, %cst_35 {dimension_numbers = #tpu.dot_dimension_numbers<[1], [0], [0], [1], [0, 0, 1, 1], [], []>} : vector<4x4xf32>, vector<4x512xf32>, vector<4x512xf32> -> vector<4x512xf32>
    %61 = arith.addf %53, %60 : vector<4x512xf32>
    %c4 = arith.constant 4 : index
    %c0_36 = arith.constant 0 : index
    %c0_37 = arith.constant 0 : index
    %62 = vector.load %arg5[%c4, %c0_36, %c0_37] : memref<5x4x4xf32, #tpu.memory_space<vmem>>, vector<1x4x4xf32>
    %63 = vector.shape_cast %62 : vector<1x4x4xf32> to vector<4x4xf32>
    %cst_38 = arith.constant dense<0.000000e+00> : vector<4x512xf32>
    %64 = tpu.matmul %63, %30, %cst_38 {dimension_numbers = #tpu.dot_dimension_numbers<[1], [0], [0], [1], [0, 0, 1, 1], [], []>} : vector<4x4xf32>, vector<4x512xf32>, vector<4x512xf32> -> vector<4x512xf32>
    %65 = arith.addf %61, %64 : vector<4x512xf32>
    %c0_39 = arith.constant 0 : index
    %c0_40 = arith.constant 0 : index
    %66 = vector.load %arg6[%c0_39, %c0_40] : memref<4x1xf32, #tpu.memory_space<vmem>>, vector<4x1xf32>
    %67 = vector.broadcast %66 : vector<4x1xf32> to vector<4x512xf32>
    %68 = arith.addf %65, %67 : vector<4x512xf32>
    %c0_41 = arith.constant 0 : index
    %c0_42 = arith.constant 0 : index
    %69 = vector.load %arg7[%c0_41, %c0_42] : memref<4x1xf32, #tpu.memory_space<vmem>>, vector<4x1xf32>
    %c0_43 = arith.constant 0 : index
    %c0_44 = arith.constant 0 : index
    %70 = vector.load %arg8[%c0_43, %c0_44] : memref<4x1xf32, #tpu.memory_space<vmem>>, vector<4x1xf32>
    %cst_45 = arith.constant dense<0.000000e+00> : vector<4xf32>
    %71 = vector.multi_reduction <add>, %68, %cst_45 [1] : vector<4x512xf32> to vector<4xf32>
    %72 = vector.shape_cast %71 : vector<4xf32> to vector<4x1xf32>
    %cst_46 = arith.constant 0.001953125 : f32
    %73 = vector.broadcast %cst_46 : f32 to vector<4x1xf32>
    %74 = arith.mulf %72, %73 : vector<4x1xf32>
    %75 = arith.mulf %68, %68 : vector<4x512xf32>
    %cst_47 = arith.constant dense<0.000000e+00> : vector<4xf32>
    %76 = vector.multi_reduction <add>, %75, %cst_47 [1] : vector<4x512xf32> to vector<4xf32>
    %77 = vector.shape_cast %76 : vector<4xf32> to vector<4x1xf32>
    %cst_48 = arith.constant 0.001953125 : f32
    %78 = vector.broadcast %cst_48 : f32 to vector<4x1xf32>
    %79 = arith.mulf %77, %78 : vector<4x1xf32>
    %80 = arith.mulf %74, %74 : vector<4x1xf32>
    %81 = arith.subf %79, %80 : vector<4x1xf32>
    %cst_49 = arith.constant 9.99999974E-6 : f32
    %82 = vector.broadcast %cst_49 : f32 to vector<4x1xf32>
    %83 = arith.addf %81, %82 : vector<4x1xf32>
    %84 = math.rsqrt %83 : vector<4x1xf32>
    %85 = arith.mulf %84, %69 : vector<4x1xf32>
    %86 = vector.broadcast %74 : vector<4x1xf32> to vector<4x512xf32>
    %87 = arith.subf %68, %86 : vector<4x512xf32>
    %88 = vector.broadcast %85 : vector<4x1xf32> to vector<4x512xf32>
    %89 = arith.mulf %87, %88 : vector<4x512xf32>
    %90 = vector.broadcast %70 : vector<4x1xf32> to vector<4x512xf32>
    %91 = arith.addf %89, %90 : vector<4x512xf32>
    %cst_50 = arith.constant 0.000000e+00 : f32
    %92 = vector.broadcast %cst_50 : f32 to vector<4x512xf32>
    %93 = arith.maximumf %91, %92 : vector<4x512xf32>
    %c0_51 = arith.constant 0 : index
    %c0_52 = arith.constant 0 : index
    %94 = vector.load %arg10[%c0_51, %c0_52] : memref<8x4xf32, #tpu.memory_space<vmem>>, vector<8x4xf32>
    %cst_53 = arith.constant dense<0.000000e+00> : vector<8x512xf32>
    %95 = tpu.matmul %94, %93, %cst_53 {dimension_numbers = #tpu.dot_dimension_numbers<[1], [0], [0], [1], [0, 0, 1, 1], [], []>} : vector<8x4xf32>, vector<4x512xf32>, vector<8x512xf32> -> vector<8x512xf32>
    %c0_54 = arith.constant 0 : index
    %c0_55 = arith.constant 0 : index
    %96 = vector.load %arg11[%c0_54, %c0_55] : memref<8x1xf32, #tpu.memory_space<vmem>>, vector<8x1xf32>
    %97 = vector.broadcast %96 : vector<8x1xf32> to vector<8x512xf32>
    %98 = arith.addf %95, %97 : vector<8x512xf32>
    %c0_56 = arith.constant 0 : index
    %c0_57 = arith.constant 0 : index
    %99 = vector.load %arg12[%c0_56, %c0_57] : memref<8x1xf32, #tpu.memory_space<vmem>>, vector<8x1xf32>
    %c0_58 = arith.constant 0 : index
    %c0_59 = arith.constant 0 : index
    %100 = vector.load %arg13[%c0_58, %c0_59] : memref<8x1xf32, #tpu.memory_space<vmem>>, vector<8x1xf32>
    %cst_60 = arith.constant dense<0.000000e+00> : vector<8xf32>
    %101 = vector.multi_reduction <add>, %98, %cst_60 [1] : vector<8x512xf32> to vector<8xf32>
    %102 = vector.shape_cast %101 : vector<8xf32> to vector<8x1xf32>
    %cst_61 = arith.constant 0.001953125 : f32
    %103 = vector.broadcast %cst_61 : f32 to vector<8x1xf32>
    %104 = arith.mulf %102, %103 : vector<8x1xf32>
    %105 = arith.mulf %98, %98 : vector<8x512xf32>
    %cst_62 = arith.constant dense<0.000000e+00> : vector<8xf32>
    %106 = vector.multi_reduction <add>, %105, %cst_62 [1] : vector<8x512xf32> to vector<8xf32>
    %107 = vector.shape_cast %106 : vector<8xf32> to vector<8x1xf32>
    %cst_63 = arith.constant 0.001953125 : f32
    %108 = vector.broadcast %cst_63 : f32 to vector<8x1xf32>
    %109 = arith.mulf %107, %108 : vector<8x1xf32>
    %110 = arith.mulf %104, %104 : vector<8x1xf32>
    %111 = arith.subf %109, %110 : vector<8x1xf32>
    %cst_64 = arith.constant 9.99999974E-6 : f32
    %112 = vector.broadcast %cst_64 : f32 to vector<8x1xf32>
    %113 = arith.addf %111, %112 : vector<8x1xf32>
    %114 = math.rsqrt %113 : vector<8x1xf32>
    %115 = arith.mulf %114, %99 : vector<8x1xf32>
    %116 = vector.broadcast %104 : vector<8x1xf32> to vector<8x512xf32>
    %117 = arith.subf %98, %116 : vector<8x512xf32>
    %118 = vector.broadcast %115 : vector<8x1xf32> to vector<8x512xf32>
    %119 = arith.mulf %117, %118 : vector<8x512xf32>
    %120 = vector.broadcast %100 : vector<8x1xf32> to vector<8x512xf32>
    %121 = arith.addf %119, %120 : vector<8x512xf32>
    %cst_65 = arith.constant 0.000000e+00 : f32
    %122 = vector.broadcast %cst_65 : f32 to vector<8x512xf32>
    %123 = arith.maximumf %121, %122 : vector<8x512xf32>
    %124 = arith.addf %123, %0 : vector<8x512xf32>
    %cst_66 = arith.constant 0.000000e+00 : f32
    %125 = vector.broadcast %cst_66 : f32 to vector<8x512xf32>
    %126 = arith.maximumf %124, %125 : vector<8x512xf32>
    %c0_67 = arith.constant 0 : index
    %c0_68 = arith.constant 0 : index
    %127 = vector.load %arg14[%c0_67, %c0_68] : memref<8x512xf32, #tpu.memory_space<vmem>>, vector<8x512xf32>
    tpu.vector_store %arg14[%c0_67, %c0_68], %126 {strides = array<i32>} : memref<8x512xf32, #tpu.memory_space<vmem>>, vector<8x512xf32>,
    return
  }
}

</mosaic_0001>

<bundles_post_ra>
// kernel: tpu_custom_call.1
= control target key start
LH: loop header
LB: loop body
LE: loop exit
PB: predicated region body
PF: predicated region fallthrough
CT: control target
= control target key end

     0   :  { %vm59_vm0 = vcmask 64512   ;;  %v1637_v5 = vmov 0.0   ;;  %s1975_s0 = inlined_call_operand.vmem [shape: f32[8,512], index: 0, kind: input, shape index: {}]   ;;  %s1976_s1 = inlined_call_operand.vmem [shape: f32[4,8], index: 1, kind: input, shape index: {}]   ;;  %s1977_s2 = inlined_call_operand.vmem [shape: f32[4,1], index: 2, kind: input, shape index: {}]   ;;  %s1978_s3 = inlined_call_operand.vmem [shape: f32[4,1], index: 3, kind: input, shape index: {}]   ;;  %s1979_s4 = inlined_call_operand.vmem [shape: f32[4,1], index: 4, kind: input, shape index: {}]   ;;  %s1980_s5 = inlined_call_operand.vmem [shape: f32[5,4,4], index: 5, kind: input, shape index: {}]   ;;  %s1981_s6 = inlined_call_operand.vmem [shape: f32[4,1], index: 6, kind: input, shape index: {}]   ;;  %s1982_s7 = inlined_call_operand.vmem [shape: f32[4,1], index: 7, kind: input, shape index: {}]   ;;  %s1983_s8 = inlined_call_operand.vmem [shape: f32[4,1], index: 8, kind: input, shape index: {}]   ;;  %s1984_s9 = inlined_call_operand.vmem [shape: f32[5,512], index: 9, kind: input, shape index: {}]   ;;  %s1985_s10 = inlined_call_operand.vmem [shape: f32[8,4], index: 10, kind: input, shape index: {}]   ;;  %s1986_s11 = inlined_call_operand.vmem [shape: f32[8,1], index: 11, kind: input, shape index: {}]   ;;  %s1987_s12 = inlined_call_operand.vmem [shape: f32[8,1], index: 12, kind: input, shape index: {}]   ;;  %s1988_s13 = inlined_call_operand.vmem [shape: f32[8,1], index: 13, kind: input, shape index: {}]   ;;  %s1989_s14 = inlined_call_operand.hbm [shape: f32[8,512], index: 14, kind: output, shape index: {}]  }
   0x1   :  { %v1722_v0 = vld [vmem:[%s1975_s0 + $0x8] sm:$0xff]  ;;  %v1727_v1 = vld [vmem:[%s1975_s0 + $0x18] sm:$0xff]  ;;  %v1732_v2 = vld [vmem:[%s1975_s0] sm:$0xff]  ;;  %127 = vmatprep.mubr.f32.mxu0 %v1637_v5 }
   0x2   :  { %63 = vmatprep.subr.mxu0 %v1722_v0  ;;  %134 = vmatprep.subr.mxu1 %v1727_v1  ;;  %v1739_v3 = vld [vmem:[%s1975_s0 + $0x10] sm:$0xff]  ;;  %v52_v4 = vld [vmem:[%s1976_s1] sm:$0xf] }
   0x3   :  { %64 = vmatpush1.msra.mxu0 %v1732_v2 }
   0x4   :  { %19 = vsyncpa [#allocation3], 0  ;;  %135 = vmatpush1.msra.mxu1 %v1739_v3  ;;  %198 = vmatprep.mubr.f32.mxu1 %v1637_v5  ;;  %v53_v6 = vld [vmem:[%s1977_s2] sm:$0xf]  ;;  %v1638_v7 = vmov 0   ;;  %vm207_vm1 = vcmask 1043456  }
   0x5   :  { %1537 = vmatmul.mubr.msk.f32.vlgmr.msra.gmra.mrb[0].mxu0 %vm59_vm0, %v52_v4  ;;  %1538 = vmatmul.mubr.msk.f32.vlgmr.msra.gmra.mrb[0].mxu1 %vm59_vm0, %v52_v4  ;;  %v205_v42 = vld [vmem:[%s1978_s3] sm:$0xf]  ;;  %s1639_s3 = smov 16   ;;  %s1641_s26 = smov 1   ;;  %vm347_vm3 = vcmask 31744  }
   0x6   :  { %1605 = vset.pattern.permute.xlu0 %v1638_v7  ;;  %1606 = vset.pattern.permute.xlu1 %v1638_v7  ;;  %v206_v45 = vld [vmem:[%s1979_s4] sm:$0xf]  ;;  %s1640_s4 = smov 15   ;;  %s1642_s27 = smov 17  }
   0x7   :  { %56 = vperm.xlu0 %1605, %v53_v6   ;;  %427 = vmatprep.mubr.f32.mxu0 %v1637_v5  ;;  %v1231_v4 = vld [vmem:[%s1981_s6] sm:$0xf]  ;;  %v271_v6 = vlaneseq }
   0x8   :  { %498 = vmatprep.mubr.f32.mxu1 %v1637_v5 }
   0x9   :  { %v281_v7 = vshrl.u32 %v271_v6, 7 }
  0x86   :  { %v57_v8 = vpop.permute.xlu0 %56 }
  0xd8   :  { %v129_v9 = vpop.f32.mrb[0].mxu0  ;;  %v200_v10 = vpop.f32.mrb[0].mxu1 }
  0xd9   :  { %v130_v11 = vadd.f32 %v129_v9, %v57_v8  ;;  %v201_v12 = vadd.f32 %v200_v10, %v57_v8  ;;  %v131_v13 = vpop.f32.mrb[1].mxu0  ;;  %v202_v14 = vpop.f32.mrb[1].mxu1  ;;  %v1796_v9 = vsub.s32 1, %v281_v7  ;;  %v1539_v10 = vld [vmem:[%s1984_s9 + $0x1] ss:$8 sm:$0xf] }
  0xda   :  { %v132_v15 = vadd.f32 %v131_v13, %v57_v8  ;;  %v203_v16 = vadd.f32 %v202_v14, %v57_v8  ;;  %v1794_v8 = vand.u32 127, %v271_v6  ;;  %v1803_v13 = vsub.s32 0, %v281_v7 }
  0xdb   :  { %v208_v17 = vsel %vm207_vm1, %v130_v11, 0.0  ;;  %v218_v18 = vmul.f32 %v130_v11, %v130_v11  ;;  %v220_v21 = vmul.f32 %v201_v12, %v201_v12  ;;  %v211_v24 = vsel %vm207_vm1, %v201_v12, 0.0 }
  0xdc   :  { %v209_v19 = vsel %vm207_vm1, %v132_v15, 0.0  ;;  %v219_v20 = vmul.f32 %v132_v15, %v132_v15  ;;  %v221_v25 = vmul.f32 %v203_v16, %v203_v16  ;;  %v213_v29 = vsel %vm207_vm1, %v203_v16, 0.0 }
  0xdd   :  { %v210_v22 = vadd.f32 %v209_v19, %v208_v17  ;;  %v222_v23 = vsel %vm207_vm1, %v218_v18, 0.0  ;;  %v225_v30 = vsel %vm207_vm1, %v220_v21, 0.0  ;;  %vm313_vm2 = vcmp.lt.s32.totalorder %v1794_v8, 16 }
  0xde   :  { %v223_v26 = vsel %vm207_vm1, %v219_v20, 0.0  ;;  %v227_v33 = vsel %vm207_vm1, %v221_v25, 0.0  ;;  %v1805_v14 = vsub.s32 3, %v281_v7  ;;  %v324_v19 = vrot.slane %v1539_v10, %v1803_v13 }
  0xdf   :  { %v212_v27 = vadd.f32 %v211_v24, %v210_v22  ;;  %v224_v28 = vadd.f32 %v223_v26, %v222_v23  ;;  %vm273_vm4 = vcmp.lt.s32.totalorder %v1794_v8, 17  ;;  %vm670_vm5 = vcmp.lt.s32.totalorder %v1794_v8, 15 }
  0xe0   :  { %v336_v20 = vrot.slane %v1539_v10, %v1805_v14  ;;  %vm873_vm6 = vcmp.lt.s32.totalorder %v1794_v8, 1  ;;  %v1569_v8 = vld [vmem:[%s1980_s5 + $0x10] sm:$0xf] }
  0xe1   :  { %v214_v31 = vadd.f32 %v213_v29, %v212_v27  ;;  %v226_v32 = vadd.f32 %v225_v30, %v224_v28  ;;  %v1540_v29 = vld [vmem:[%s1980_s5 + $0x4] sm:$0xf] }
  0xe3   :  { %215 = vadd.xlane.f32.xlu0 %v214_v31  ;;  %v228_v34 = vadd.f32 %v227_v33, %v226_v32  ;;  %v278_v31 = vld [vmem:[%s1984_s9] ss:$8 sm:$0xf] }
  0xe4   :  { %v287_v33 = vrot.slane %v278_v31, %v1796_v9 }
  0xe5   :  { %229 = vadd.xlane.f32.xlu1 %v228_v34 }
 0x170   :  { %v216_v35 = vpop.xlane.xlu0 %215 }
 0x171   :  { %v217_v36 = vmul.f32 0.001953125, %v216_v35 }
 0x172   :  { %v230_v37 = vpop.xlane.xlu1 %229 }
 0x173   :  { %v231_v38 = vmul.f32 0.001953125, %v230_v37  ;;  %v232_v39 = vmul.f32 %v217_v36, %v217_v36  ;;  %v237_v47 = vsub.f32 %v130_v11, %v217_v36  ;;  %v239_v48 = vsub.f32 %v201_v12, %v217_v36 }
 0x174   :  { %v238_v49 = vsub.f32 %v132_v15, %v217_v36  ;;  %v240_v56 = vsub.f32 %v203_v16, %v217_v36  ;;  %v328_v12 = vrot.slane %v1539_v10, %v1796_v9  ;;  %v1807_v15 = vsub.s32 2, %v281_v7  ;;  %v1561_v7 = vld [vmem:[%s1984_s9 + $0x3] ss:$8 sm:$0xf] }
 0x175   :  { %v233_v40 = vsub.f32 %v231_v38, %v232_v39  ;;  %v283_v37 = vrot.slane %v278_v31, %v1803_v13 }
 0x176   :  { %v332_v22 = vrot.slane %v1539_v10, %v1807_v15 }
 0x177   :  { %v234_v41 = vadd.f32 1e-05, %v233_v40 }
 0x179   :  { %1607 = vrsqrt.f32 %v234_v41 }
 0x183   :  { %v1608_v43 = vpop.eup %1607 }
 0x184   :  { %v236_v44 = vmul.f32 %v1608_v43, %v205_v42  ;;  %v291_v42 = vrot.slane %v278_v31, %v1807_v15  ;;  %v295_v43 = vrot.slane %v278_v31, %v1805_v14 }
 0x186   :  { %243 = vperm.xlu1 %1606, %v236_v44   ;;  %v304_v44 = vld [vmem:[%s1980_s5] sm:$0xf] }
 0x18a   :  { %252 = vperm.xlu1 %1606, %v206_v45  }
 0x205   :  { %v244_v46 = vpop.permute.xlu1 %243 }
 0x206   :  { %v246_v50 = vmul.f32 %v244_v46, %v237_v47  ;;  %v248_v51 = vmul.f32 %v244_v46, %v239_v48  ;;  %v247_v53 = vmul.f32 %v244_v46, %v238_v49  ;;  %v249_v60 = vmul.f32 %v244_v46, %v240_v56  ;;  %v1553_v46 = vld [vmem:[%s1984_s9 + $0x2] ss:$8 sm:$0xf] }
 0x207   :  { %v681_v56 = vrot.slane %v1553_v46, %v1803_v13 }
 0x209   :  { %v253_v52 = vpop.permute.xlu1 %252 }
 0x20a   :  { %v255_v54 = vadd.f32 %v253_v52, %v246_v50  ;;  %v257_v55 = vadd.f32 %v253_v52, %v248_v51  ;;  %v256_v57 = vadd.f32 %v253_v52, %v247_v53  ;;  %v258_v61 = vadd.f32 %v253_v52, %v249_v60 }
 0x20b   :  { %v685_v52 = vrot.slane %v1553_v46, %v1796_v9  ;;  %v689_v60 = vrot.slane %v1553_v46, %v1807_v15 }
 0x20c   :  { %v1767_v58 = vmax.f32 %v255_v54, 0.0  ;;  %v1769_v59 = vmax.f32 %v257_v55, 0.0  ;;  %v1773_v62 = vmax.f32 %v256_v57, 0.0  ;;  %v1777_v63 = vmax.f32 %v258_v61, 0.0 }
 0x20d   :  { %v693_v57 = vrot.slane %v1553_v46, %v1805_v14 }
 0x20e   :  { %309 = vrot.lane.b32.xlu0 %v1769_v59, %s1639_s3  ;;  %305 = vrot.lane.b32.xlu1 %v1767_v58, %s1639_s3 }
 0x212   :  { %664 = vrot.lane.b32.xlu0 %v1773_v62, %s1640_s4  ;;  %307 = vrot.lane.b32.xlu1 %v1773_v62, %s1639_s3 }
 0x216   :  { %666 = vrot.lane.b32.xlu0 %v1769_v59, %s1640_s4  ;;  %311 = vrot.lane.b32.xlu1 %v1777_v63, %s1639_s3 }
 0x21a   :  { %867 = vrot.lane.b32.xlu0 %v1773_v62, %s1641_s26  ;;  %263 = vrot.lane.b32.xlu1 %v1767_v58, %s1642_s27 }
 0x21e   :  { %869 = vrot.lane.b32.xlu0 %v1769_v59, %s1641_s26  ;;  %265 = vrot.lane.b32.xlu1 %v1773_v62, %s1642_s27 }
 0x222   :  { %269 = vrot.lane.b32.xlu1 %v1777_v63, %s1642_s27 }
 0x226   :  { %267 = vrot.lane.b32.xlu1 %v1769_v59, %s1642_s27 }
 0x22a   :  { %662 = vrot.lane.b32.xlu1 %v1767_v58, %s1640_s4 }
 0x22e   :  { %668 = vrot.lane.b32.xlu1 %v1777_v63, %s1640_s4 }
 0x232   :  { %865 = vrot.lane.b32.xlu1 %v1767_v58, %s1641_s26 }
 0x236   :  { %871 = vrot.lane.b32.xlu1 %v1777_v63, %s1641_s26 }
 0x23a   :  { %1234 = vperm.xlu1 %1606, %v1231_v4  }
 0x280   :  { %v306_v11 = vpop.permute.xlu1 %305  ;;  %v310_v21 = vpop.permute.xlu0 %309 }
 0x284   :  { %v308_v16 = vpop.permute.xlu1 %307  ;;  %v665_v38 = vpop.permute.xlu0 %664 }
 0x285   :  { %v316_v17 = vsel %vm313_vm2, %v306_v11, %v308_v16  ;;  %v315_v23 = vsel %vm313_vm2, %v308_v16, %v310_v21 }
 0x286   :  { %v342_v18 = vmul.f32 %v328_v12, %v316_v17  ;;  %v343_v30 = vmul.f32 %v332_v22, %v315_v23  ;;  %v888_v17 = vrot.slane %v1561_v7, %v1796_v9  ;;  %v884_v23 = vrot.slane %v1561_v7, %v1803_v13 }
 0x288   :  { %1541 = vmatprep.subr.msk.mxu0 %vm207_vm1, %v342_v18  ;;  %v312_v24 = vpop.permute.xlu1 %311  ;;  %v667_v47 = vpop.permute.xlu0 %666  ;;  %v1554_v18 = vld [vmem:[%s1980_s5 + $0x8] sm:$0xf] }
 0x289   :  { %v314_v25 = vsel %vm313_vm2, %v310_v21, %v312_v24  ;;  %v317_v26 = vsel %vm313_vm2, %v312_v24, %v306_v11  ;;  %v672_v4 = vsel %vm670_vm5, %v665_v38, %v667_v47  ;;  %v896_v24 = vrot.slane %v1561_v7, %v1805_v14 }
 0x28a   :  { %v341_v27 = vmul.f32 %v324_v19, %v317_v26  ;;  %v344_v28 = vmul.f32 %v336_v20, %v314_v25  ;;  %v700_v19 = vmul.f32 %v689_v60, %v672_v4  ;;  %v892_v25 = vrot.slane %v1561_v7, %v1807_v15  ;;  %v1562_v15 = vld [vmem:[%s1980_s5 + $0xc] sm:$0xf] }
 0x28c   :  { %1542 = vmatpush1.msk.msra.mxu0 %vm207_vm1, %v341_v27  ;;  %1544 = vmatprep.subr.msk.mxu1 %vm207_vm1, %v344_v28  ;;  %v264_v32 = vpop.permute.xlu1 %263  ;;  %v868_v61 = vpop.permute.xlu0 %867 }
 0x28d   :  { %1545 = vmatpush1.msk.msra.mxu1 %vm207_vm1, %v343_v30  ;;  %1543 = vmatmul.mubr.msk.f32.vlgmr.msra.gmra.mrb[2].mxu0 %vm347_vm3, %v1540_v29 }
 0x28e   :  { %1546 = vmatmul.mubr.msk.f32.vlgmr.msra.gmra.mrb[2].mxu1 %vm347_vm3, %v1540_v29  ;;  %584 = vmatprep.mubr.f32.mxu0 %v1637_v5 }
 0x28f   :  { %655 = vmatprep.mubr.f32.mxu1 %v1637_v5 }
 0x290   :  { %v266_v34 = vpop.permute.xlu1 %265  ;;  %v870_v21 = vpop.permute.xlu0 %869 }
 0x291   :  { %v276_v35 = vsel %vm273_vm4, %v264_v32, %v266_v34  ;;  %v875_v26 = vsel %vm873_vm6, %v868_v61, %v870_v21 }
 0x292   :  { %v301_v36 = vmul.f32 %v287_v33, %v276_v35  ;;  %v903_v30 = vmul.f32 %v892_v25, %v875_v26 }
 0x294   :  { %1547 = vmatprep.subr.msk.mxu0 %vm207_vm1, %v301_v36  ;;  %v270_v39 = vpop.permute.xlu1 %269 }
 0x295   :  { %v277_v40 = vsel %vm273_vm4, %v270_v39, %v264_v32 }
 0x296   :  { %v300_v41 = vmul.f32 %v283_v37, %v277_v40 }
 0x298   :  { %1548 = vmatpush1.msk.msra.mxu0 %vm207_vm1, %v300_v41  ;;  %v268_v45 = vpop.permute.xlu1 %267 }
 0x299   :  { %v274_v48 = vsel %vm273_vm4, %v268_v45, %v270_v39  ;;  %v275_v49 = vsel %vm273_vm4, %v266_v34, %v268_v45  ;;  %1549 = vmatmul.mubr.msk.f32.vlgmr.msra.gmra.mrb[2].mxu0 %vm347_vm3, %v304_v44 }
 0x29a   :  { %v302_v50 = vmul.f32 %v291_v42, %v275_v49  ;;  %v303_v51 = vmul.f32 %v295_v43, %v274_v48  ;;  %783 = vmatprep.mubr.f32.mxu0 %v1637_v5 }
 0x29c   :  { %1550 = vmatprep.subr.msk.mxu1 %vm207_vm1, %v303_v51  ;;  %v663_v53 = vpop.permute.xlu1 %662 }
 0x29d   :  { %v673_v54 = vsel %vm670_vm5, %v663_v53, %v665_v38  ;;  %1551 = vmatpush1.msk.msra.mxu1 %vm207_vm1, %v302_v50 }
 0x29e   :  { %v699_v55 = vmul.f32 %v685_v52, %v673_v54  ;;  %1552 = vmatmul.mubr.msk.f32.vlgmr.msra.gmra.mrb[2].mxu1 %vm347_vm3, %v304_v44 }
 0x29f   :  { %854 = vmatprep.mubr.f32.mxu1 %v1637_v5 }
 0x2a0   :  { %1555 = vmatprep.subr.msk.mxu0 %vm207_vm1, %v699_v55  ;;  %v669_v6 = vpop.permute.xlu1 %668 }
 0x2a1   :  { %v671_v10 = vsel %vm670_vm5, %v667_v47, %v669_v6  ;;  %v674_v11 = vsel %vm670_vm5, %v669_v6, %v663_v53  ;;  %v1242_v53 = vld [vmem:[%s1983_s8] sm:$0xf] }
 0x2a2   :  { %v698_v12 = vmul.f32 %v681_v56, %v674_v11  ;;  %v701_v16 = vmul.f32 %v693_v57, %v671_v10  ;;  %v1241_v6 = vld [vmem:[%s1982_s7] sm:$0xf] }
 0x2a3   :  { %v1299_v11 = vld [vmem:[%s1986_s11] sm:$0xff] }
 0x2a4   :  { %1556 = vmatpush1.msk.msra.mxu0 %vm207_vm1, %v698_v12  ;;  %1558 = vmatprep.subr.msk.mxu1 %vm207_vm1, %v701_v16  ;;  %v866_v20 = vpop.permute.xlu1 %865 }
 0x2a5   :  { %v876_v22 = vsel %vm873_vm6, %v866_v20, %v868_v61  ;;  %1557 = vmatmul.mubr.msk.f32.vlgmr.msra.gmra.mrb[2].mxu0 %vm347_vm3, %v1554_v18  ;;  %1559 = vmatpush1.msk.msra.mxu1 %vm207_vm1, %v700_v19 }
 0x2a6   :  { %v902_v9 = vmul.f32 %v888_v17, %v876_v22  ;;  %1560 = vmatmul.mubr.msk.f32.vlgmr.msra.gmra.mrb[2].mxu1 %vm347_vm3, %v1554_v18  ;;  %986 = vmatprep.mubr.f32.mxu0 %v1637_v5 }
 0x2a7   :  { %1057 = vmatprep.mubr.f32.mxu1 %v1637_v5 }
 0x2a8   :  { %1563 = vmatprep.subr.msk.mxu0 %vm207_vm1, %v902_v9  ;;  %v872_v27 = vpop.permute.xlu1 %871 }
 0x2a9   :  { %v874_v28 = vsel %vm873_vm6, %v870_v21, %v872_v27  ;;  %v877_v13 = vsel %vm873_vm6, %v872_v27, %v866_v20 }
 0x2aa   :  { %v901_v29 = vmul.f32 %v884_v23, %v877_v13  ;;  %v904_v14 = vmul.f32 %v896_v24, %v874_v28 }
 0x2ac   :  { %1564 = vmatpush1.msk.msra.mxu0 %vm207_vm1, %v901_v29  ;;  %1566 = vmatprep.subr.msk.mxu1 %vm207_vm1, %v904_v14 }
 0x2ad   :  { %1565 = vmatmul.mubr.msk.f32.vlgmr.msra.gmra.mrb[2].mxu0 %vm347_vm3, %v1562_v15  ;;  %1567 = vmatpush1.msk.msra.mxu1 %vm207_vm1, %v903_v30 }
 0x2ae   :  { %1570 = vmatprep.subr.msk.mxu0 %vm207_vm1, %v1773_v62  ;;  %1568 = vmatmul.mubr.msk.f32.vlgmr.msra.gmra.mrb[2].mxu1 %vm347_vm3, %v1562_v15  ;;  %v1298_v15 = vld [vmem:[%s1985_s10] sm:$0xff] }
 0x2af   :  { %1571 = vmatpush1.msk.msra.mxu0 %vm207_vm1, %v1767_v58  ;;  %1573 = vmatprep.subr.msk.mxu1 %vm207_vm1, %v1777_v63 }
 0x2b0   :  { %1574 = vmatpush1.msk.msra.mxu1 %vm207_vm1, %v1769_v59  ;;  %1149 = vmatprep.mubr.f32.mxu0 %v1637_v5 }
 0x2b1   :  { %1220 = vmatprep.mubr.f32.mxu1 %v1637_v5 }
 0x2b5   :  { %1572 = vmatmul.mubr.msk.f32.vlgmr.msra.gmra.mrb[2].mxu0 %vm347_vm3, %v1569_v8 }
 0x2b6   :  { %1575 = vmatmul.mubr.msk.f32.vlgmr.msra.gmra.mrb[2].mxu1 %vm347_vm3, %v1569_v8  ;;  %1384 = vmatprep.mubr.f32.mxu0 %v1637_v5 }
 0x2b7   :  { %1455 = vmatprep.mubr.f32.mxu1 %v1637_v5 }
 0x2b9   :  { %v1235_v58 = vpop.permute.xlu1 %1234 }
 0x388   :  { %v1151_v62 = vpop.f32.mrb[2].mxu0 }
 0x389   :  { %v1237_v63 = vadd.f32 %v1235_v58, %v1151_v62  ;;  %v1153_v59 = vpop.f32.mrb[3].mxu0  ;;  %v1222_v31 = vpop.f32.mrb[2].mxu1 }
 0x38a   :  { %v1238_v32 = vadd.f32 %v1235_v58, %v1153_v59  ;;  %v1239_v33 = vadd.f32 %v1235_v58, %v1222_v31  ;;  %v1224_v34 = vpop.f32.mrb[3].mxu1 }
 0x38b   :  { %v1243_v35 = vsel %vm207_vm1, %v1237_v63, 0.0  ;;  %v1253_v36 = vmul.f32 %v1237_v63, %v1237_v63  ;;  %v1240_v37 = vadd.f32 %v1235_v58, %v1224_v34 }
 0x38c   :  { %v1244_v38 = vsel %vm207_vm1, %v1238_v32, 0.0  ;;  %v1254_v39 = vmul.f32 %v1238_v32, %v1238_v32  ;;  %v1255_v40 = vmul.f32 %v1239_v33, %v1239_v33  ;;  %v1246_v5 = vsel %vm207_vm1, %v1239_v33, 0.0 }
 0x38d   :  { %v1245_v41 = vadd.f32 %v1244_v38, %v1243_v35  ;;  %v1257_v42 = vsel %vm207_vm1, %v1253_v36, 0.0  ;;  %v1256_v43 = vmul.f32 %v1240_v37, %v1240_v37  ;;  %v1248_v47 = vsel %vm207_vm1, %v1240_v37, 0.0 }
 0x38e   :  { %v1258_v44 = vsel %vm207_vm1, %v1254_v39, 0.0  ;;  %v1260_v48 = vsel %vm207_vm1, %v1255_v40, 0.0 }
 0x38f   :  { %v1247_v45 = vadd.f32 %v1246_v5, %v1245_v41  ;;  %v1259_v46 = vadd.f32 %v1258_v44, %v1257_v42  ;;  %v1262_v51 = vsel %vm207_vm1, %v1256_v43, 0.0  ;;  %v1463_v43 = vld [vmem:[%s1988_s13] sm:$0xff] }
 0x391   :  { %v1249_v49 = vadd.f32 %v1248_v47, %v1247_v45  ;;  %v1261_v50 = vadd.f32 %v1260_v48, %v1259_v46 }
 0x393   :  { %1250 = vadd.xlane.f32.xlu0 %v1249_v49  ;;  %v1263_v52 = vadd.f32 %v1262_v51, %v1261_v50  ;;  %v1462_v51 = vld [vmem:[%s1987_s12] sm:$0xff]  ;;  %s1643_s12 = smov [#allocation2]  }
 0x394   :  { %s1529_s13 = sshll.u32 %s1643_s12, 4  ;;  %s1530_s13 = int_to_ptr.vmem [resolvable:$true] %s1529_s13 }
 0x395   :  { %1264 = vadd.xlane.f32.xlu1 %v1263_v52  ;;  %s1613_s6 = scalar_lea.vmem %s1530_s13, 512  ;;  %p1618_p1 = scmp.lt.s32.totalorder %s1530_s13, %s1530_s13 }
 0x396   :  { %p1614_p0 = scmp.ne.s32.totalorder %s1530_s13, %s1613_s6  ;;  %p1619_p2 = scmp.lt.s32.totalorder %s1613_s6, %s1613_s6 }
 0x398   :  { %p1620_p3 = por %p1619_p2, %p1618_p1 }
 0x39a   :  { %p1621_p4 = pnand %p1620_p3, %p1614_p0 }
 0x3a6   :  { %1287 = vperm.xlu1 %1606, %v1242_v53  }
 0x420   :  { %v1251_v54 = vpop.xlane.xlu0 %1250 }
 0x421   :  { %v1252_v55 = vmul.f32 0.001953125, %v1251_v54 }
 0x422   :  { %v1265_v56 = vpop.xlane.xlu1 %1264 }
 0x423   :  { %v1266_v57 = vmul.f32 0.001953125, %v1265_v56  ;;  %v1267_v60 = vmul.f32 %v1252_v55, %v1252_v55  ;;  %v1272_v12 = vsub.f32 %v1237_v63, %v1252_v55  ;;  %v1273_v16 = vsub.f32 %v1238_v32, %v1252_v55 }
 0x424   :  { %v1274_v17 = vsub.f32 %v1239_v33, %v1252_v55  ;;  %v1275_v18 = vsub.f32 %v1240_v37, %v1252_v55 }
 0x425   :  { %v1268_v61 = vsub.f32 %v1266_v57, %v1267_v60 }
 0x426   :  { %v1288_v23 = vpop.permute.xlu1 %1287 }
 0x427   :  { %v1269_v4 = vadd.f32 1e-05, %v1268_v61 }
 0x429   :  { %1609 = vrsqrt.f32 %v1269_v4 }
 0x433   :  { %v1610_v7 = vpop.eup %1609 }
 0x434   :  { %v1271_v10 = vmul.f32 %v1610_v7, %v1241_v6 }
 0x436   :  { %1278 = vperm.xlu0 %1605, %v1271_v10  }
 0x43a   :  { %1302 = vperm.xlu0 %1605, %v1299_v11  }
 0x4b5   :  { %v1279_v19 = vpop.permute.xlu0 %1278 }
 0x4b6   :  { %v1281_v20 = vmul.f32 %v1279_v19, %v1272_v12  ;;  %v1282_v21 = vmul.f32 %v1279_v19, %v1273_v16  ;;  %v1283_v22 = vmul.f32 %v1279_v19, %v1274_v17  ;;  %v1284_v9 = vmul.f32 %v1279_v19, %v1275_v18 }
 0x4b8   :  { %v1290_v24 = vadd.f32 %v1288_v23, %v1281_v20  ;;  %v1291_v25 = vadd.f32 %v1288_v23, %v1282_v21  ;;  %v1292_v26 = vadd.f32 %v1288_v23, %v1283_v22  ;;  %v1293_v27 = vadd.f32 %v1288_v23, %v1284_v9 }
 0x4b9   :  { %v1303_v30 = vpop.permute.xlu0 %1302 }
 0x4ba   :  { %v1294_v28 = vmax.f32 %v1290_v24, 0.0  ;;  %v1296_v13 = vmax.f32 %v1292_v26, 0.0  ;;  %v1295_v29 = vmax.f32 %v1291_v25, 0.0  ;;  %v1297_v14 = vmax.f32 %v1293_v27, 0.0 }
 0x4bc   :  { %1576 = vmatprep.subr.msk.mxu0 %vm207_vm1, %v1295_v29  ;;  %1579 = vmatprep.subr.msk.mxu1 %vm207_vm1, %v1297_v14 }
 0x4bd   :  { %1577 = vmatpush1.msk.msra.mxu0 %vm207_vm1, %v1294_v28  ;;  %1580 = vmatpush1.msk.msra.mxu1 %vm207_vm1, %v1296_v13 }
 0x4be   :  { %1578 = vmatmul.mubr.msk.f32.vlgmr.msra.gmra.mrb[4].mxu0 %vm347_vm3, %v1298_v15  ;;  %1581 = vmatmul.mubr.msk.f32.vlgmr.msra.gmra.mrb[4].mxu1 %vm347_vm3, %v1298_v15 }
 0x591   :  { %v1386_v8 = vpop.f32.mrb[4].mxu0  ;;  %v1457_v58 = vpop.f32.mrb[4].mxu1 }
 0x592   :  { %v1387_v62 = vadd.f32 %v1386_v8, %v1303_v30  ;;  %v1388_v63 = vpop.f32.mrb[5].mxu0  ;;  %v1459_v59 = vpop.f32.mrb[5].mxu1  ;;  %v1458_v31 = vadd.f32 %v1457_v58, %v1303_v30 }
 0x593   :  { %v1389_v32 = vadd.f32 %v1388_v63, %v1303_v30  ;;  %v1460_v36 = vadd.f32 %v1459_v59, %v1303_v30 }
 0x594   :  { %v1470_v33 = vmul.f32 %v1387_v62, %v1387_v62  ;;  %v1472_v37 = vmul.f32 %v1458_v31, %v1458_v31 }
 0x595   :  { %v1464_v34 = vadd.f32 %v1389_v32, %v1387_v62  ;;  %v1471_v35 = vmul.f32 %v1389_v32, %v1389_v32  ;;  %v1473_v41 = vmul.f32 %v1460_v36, %v1460_v36 }
 0x597   :  { %v1465_v38 = vadd.f32 %v1464_v34, %v1458_v31  ;;  %v1474_v39 = vadd.f32 %v1471_v35, %v1470_v33 }
 0x599   :  { %v1466_v40 = vadd.f32 %v1465_v38, %v1460_v36  ;;  %v1475_v42 = vadd.f32 %v1474_v39, %v1472_v37 }
 0x59b   :  { %1467 = vadd.xlane.f32.xlu1 %v1466_v40  ;;  %v1476_v5 = vadd.f32 %v1475_v42, %v1473_v41 }
 0x59d   :  { %1477 = vadd.xlane.f32.xlu0 %v1476_v5 }
 0x5ac   :  { %1500 = vperm.xlu1 %1606, %v1463_v43  }
 0x628   :  { %v1468_v44 = vpop.xlane.xlu1 %1467 }
 0x629   :  { %v1469_v45 = vmul.f32 0.001953125, %v1468_v44 }
 0x62a   :  { %v1478_v46 = vpop.xlane.xlu0 %1477 }
 0x62b   :  { %v1479_v47 = vmul.f32 0.001953125, %v1478_v46  ;;  %v1480_v48 = vmul.f32 %v1469_v45, %v1469_v45  ;;  %v1485_v54 = vsub.f32 %v1387_v62, %v1469_v45  ;;  %v1486_v55 = vsub.f32 %v1389_v32, %v1469_v45 }
 0x62c   :  { %v1487_v56 = vsub.f32 %v1458_v31, %v1469_v45  ;;  %v1488_v57 = vsub.f32 %v1460_v36, %v1469_v45  ;;  %v1501_v10 = vpop.permute.xlu1 %1500 }
 0x62d   :  { %v1481_v49 = vsub.f32 %v1479_v47, %v1480_v48 }
 0x62f   :  { %v1482_v50 = vadd.f32 1e-05, %v1481_v49 }
 0x631   :  { %1611 = vrsqrt.f32 %v1482_v50 }
 0x63b   :  { %v1612_v52 = vpop.eup %1611 }
 0x63c   :  { %v1484_v53 = vmul.f32 %v1612_v52, %v1462_v51 }
 0x63e   :  { %1491 = vperm.xlu0 %1605, %v1484_v53  }
 0x6bd   :  { %v1492_v60 = vpop.permute.xlu0 %1491 }
 0x6be   :  { %v1494_v61 = vmul.f32 %v1492_v60, %v1485_v54  ;;  %v1495_v4 = vmul.f32 %v1492_v60, %v1486_v55  ;;  %v1496_v6 = vmul.f32 %v1492_v60, %v1487_v56  ;;  %v1497_v7 = vmul.f32 %v1492_v60, %v1488_v57 }
 0x6c0   :  { %v1503_v11 = vadd.f32 %v1501_v10, %v1494_v61  ;;  %v1504_v12 = vadd.f32 %v1501_v10, %v1495_v4  ;;  %v1505_v16 = vadd.f32 %v1501_v10, %v1496_v6  ;;  %v1506_v17 = vadd.f32 %v1501_v10, %v1497_v7 }
 0x6c2   :  { %v1507_v18 = vmax.f32 %v1503_v11, 0.0  ;;  %v1508_v19 = vmax.f32 %v1504_v12, 0.0  ;;  %v1509_v20 = vmax.f32 %v1505_v16, 0.0  ;;  %v1510_v21 = vmax.f32 %v1506_v17, 0.0 }
 0x6c4   :  { %v1511_v22 = vadd.f32 %v1507_v18, %v1732_v2  ;;  %v1512_v9 = vadd.f32 %v1508_v19, %v1722_v0  ;;  %v1513_v23 = vadd.f32 %v1509_v20, %v1739_v3  ;;  %v1514_v24 = vadd.f32 %v1510_v21, %v1727_v1 }
 0x6c6   :  { %v1515_v25 = vmax.f32 %v1511_v22, 0.0  ;;  %v1516_v26 = vmax.f32 %v1512_v9, 0.0  ;;  %v1517_v27 = vmax.f32 %v1513_v23, 0.0  ;;  %v1518_v28 = vmax.f32 %v1514_v24, 0.0 }
 0x6c8   :  { %1519 = vst [vmem:[#allocation2] sm:$0xff] %v1515_v25  ;;  %1520 = vst [vmem:[#allocation2 + $0x8] sm:$0xff] %v1516_v26 }
 0x6c9   :  { %1521 = vst [vmem:[#allocation2 + $0x10] sm:$0xff] %v1517_v27  ;;  %1522 = vst [vmem:[#allocation2 + $0x18] sm:$0xff] %v1518_v28 }
 0x6ca   :  { %1624 = shalt.err (!%p1621_p4)
}
 0x6cb   :  { %s1625_s18 = scalar_lea.hbm %s1989_s14, 512 }
 0x6cc   :  { %p1626_p5 = scmp.ne.s32.totalorder %s1989_s14, %s1625_s18  ;;  %p1629_p6 = scmp.lt.u32.totalorder %s1625_s18, %s1989_s14 }
 0x6ce   :  { %p1631_p7 = pnand %p1629_p6, %p1626_p5 }
 0x6d0   :  { %1634 = shalt.err (!%p1631_p7)
}
 0x6d1   :  { %1532 = dma.vmem_to_hbm [thread:$0]  %s1530_s13, 512, %s1989_s14, [#allocation3]  }
 0x6d2   :  { %1635 = dma.done.wait [#allocation3], 512  }
 0x6d3   :  { %1636 = vsyncadd [#allocation3], 4294966784 }
 0x6d4   :  { %1536 = vsyncpa [#allocation3], 1 }

</bundles_post_ra>
